<compile_context>
chip_gen: v7x
topology: tpu7x:2x2x1
jax: 0.10.0
libtpu: 0.0.40
codegen_flags: <defaults>
</compile_context>

<pallas_src>
import functools

import jax
import jax.numpy as jnp
from jax.experimental import pallas as pl
from jax.experimental.pallas import tpu as pltpu

PATCH = 14
IN_CH = 3
EMBED = 32          # ViT-L/14 uses 1024; shrunk for this synthetic test
DEPTH = 4           # ViT-L/14 uses 24; only the last 4 blocks are returned anyway
HEADS = 4           # ViT-L/14 uses 16
MLP_HIDDEN = 4 * EMBED
LN_EPS = 1e-6
N_OUT_LAYERS = 4


# ----------------------------- Pallas kernels ------------------------------

def _layernorm(v, w, b):
    mu = jnp.mean(v, axis=-1, keepdims=True)
    var = jnp.mean(jnp.square(v - mu), axis=-1, keepdims=True)
    return (v - mu) * jax.lax.rsqrt(var + LN_EPS) * w + b


def patch_embed_kernel(p_ref, w_ref, b_ref, o_ref):
    # (B*N, Cin*14*14) @ (Cin*14*14, C) + (1, C)  ==  Conv2d(k=14, s=14)
    o_ref[...] = (jnp.dot(p_ref[...], w_ref[...],
                          preferred_element_type=jnp.float32) + b_ref[...])


def fused_blocks_kernel(x0_ref, ln1w_ref, ln1b_ref, qkvw_ref, qkvb_ref,
                        projw_ref, projb_ref, ls1_ref,
                        ln2w_ref, ln2b_ref, fc1w_ref, fc1b_ref,
                        fc2w_ref, fc2b_ref, ls2_ref,
                        normw_ref, normb_ref,
                        out_ref, resid_ref, *, num_heads):
    d = pl.program_id(1)            # depth axis ("arbitrary", innermost carry axis)

    @pl.when(d == 0)
    def _():                        # start of this batch element's depth sweep
        resid_ref[...] = x0_ref[0]

    x = resid_ref[...]              # (T, C) f32 residual stream, resident in VMEM
    T, C = x.shape
    hd = C // num_heads
    scale = hd ** -0.5

    # Head-separation mask (H, 1, C): mask[h, 0, c] = 1 iff channel c belongs to head h.
    # Lets us batch all heads in single einsums (full K=C contraction on the MXU)
    # instead of a per-head Python loop with 8-lane slices.
    ch = jax.lax.broadcasted_iota(jnp.int32, (num_heads, 1, C), 2)
    hh = jax.lax.broadcasted_iota(jnp.int32, (num_heads, 1, C), 0)
    head_mask = (ch // hd == hh).astype(jnp.float32)

    # --- attention branch ---
    xh = _layernorm(x, ln1w_ref[0], ln1b_ref[0])
    qkv = jnp.dot(xh.astype(jnp.bfloat16), qkvw_ref[0],
                  preferred_element_type=jnp.float32) + qkvb_ref[0]        # (T, 3C)
    q, k, v = qkv[:, :C], qkv[:, C:2 * C], qkv[:, 2 * C:]

    qm = (q[None] * head_mask).astype(jnp.bfloat16)                        # (H, T, C)
    kb = jnp.broadcast_to(k[None], (num_heads, T, C)).astype(jnp.bfloat16)
    vb = jnp.broadcast_to(v[None], (num_heads, T, C)).astype(jnp.bfloat16)

    s = jnp.einsum('hqc,hkc->hqk', qm, kb,
                   preferred_element_type=jnp.float32) * scale             # (H, T, T)
    s = s - jnp.max(s, axis=-1, keepdims=True)
    e = jnp.exp(s)
    p = e * pl.reciprocal(jnp.sum(e, axis=-1, keepdims=True), approx=True)
    ov = jnp.einsum('hqk,hkc->hqc', p.astype(jnp.bfloat16), vb,
                    preferred_element_type=jnp.float32)                    # (H, T, C)
    attn = jnp.sum(ov * head_mask, axis=0)                                 # == concat(heads)
    attn = jnp.dot(attn.astype(jnp.bfloat16), projw_ref[0],
                   preferred_element_type=jnp.float32) + projb_ref[0]
    x = x + ls1_ref[0] * attn                                              # LayerScale + res

    # --- MLP branch ---
    xh2 = _layernorm(x, ln2w_ref[0], ln2b_ref[0])
    h1 = jnp.dot(xh2.astype(jnp.bfloat16), fc1w_ref[0],
                 preferred_element_type=jnp.float32) + fc1b_ref[0]
    # TODO(synk): DINOv2 uses exact (erf) GELU; tanh approximation kept for safe lowering.
    h1 = jax.nn.gelu(h1, approximate=True)
    mlp = jnp.dot(h1.astype(jnp.bfloat16), fc2w_ref[0],
                  preferred_element_type=jnp.float32) + fc2b_ref[0]
    x = x + ls2_ref[0] * mlp

    resid_ref[...] = x
    # Fused final LayerNorm of get_intermediate_layers(..., norm=True); one output
    # slab per block (DEPTH == N_OUT_LAYERS here, so every block is returned).
    out_ref[0, 0] = _layernorm(x, normw_ref[...], normb_ref[...])


# ------------------------------ pallas_call wrappers ------------------------

def patch_embed(patches, w, b):
    BN, P = patches.shape
    C = w.shape[1]
    return pl.pallas_call(
        patch_embed_kernel,
        out_shape=jax.ShapeDtypeStruct((BN, C), jnp.float32),
        grid=(1,),
        in_specs=[pl.BlockSpec((BN, P), lambda i: (0, 0)),
                  pl.BlockSpec((P, C), lambda i: (0, 0)),
                  pl.BlockSpec((1, C), lambda i: (0, 0))],
        out_specs=pl.BlockSpec((BN, C), lambda i: (0, 0)),
    )(patches, w, b)


def fused_blocks(xseq, params):
    """All DEPTH transformer blocks + final LayerNorm in a single pallas_call."""
    B, T, C = xseq.shape
    blocks = params['blocks']
    D = len(blocks)
    Hm = blocks[0]['fc1_w'].shape[1]

    def stack(name, dtype=jnp.float32):
        return jnp.stack([blk[name] for blk in blocks]).astype(dtype)

    def per_block(r, c):           # weights stacked over DEPTH; pick block d
        return pl.BlockSpec((1, r, c), lambda b, d: (d, 0, 0))

    def shared(r, c):              # shared across the whole grid
        return pl.BlockSpec((r, c), lambda b, d: (0, 0))

    return pl.pallas_call(
        functools.partial(fused_blocks_kernel, num_heads=HEADS),
        out_shape=jax.ShapeDtypeStruct((D, B, T, C), jnp.float32),
        grid=(B, D),               # batch ("parallel", 2-TC split on v7x) x depth (carry)
        in_specs=[pl.BlockSpec((1, T, C), lambda b, d: (b, 0, 0)),
                  per_block(1, C), per_block(1, C),
                  per_block(C, 3 * C), per_block(1, 3 * C),
                  per_block(C, C), per_block(1, C), per_block(1, C),
                  per_block(1, C), per_block(1, C),
                  per_block(C, Hm), per_block(1, Hm),
                  per_block(Hm, C), per_block(1, C), per_block(1, C),
                  shared(1, C), shared(1, C)],
        out_specs=pl.BlockSpec((1, 1, T, C), lambda b, d: (d, b, 0, 0)),
        scratch_shapes=[pltpu.VMEM((T, C), jnp.float32)],
        compiler_params=pltpu.CompilerParams(
            dimension_semantics=("parallel", "arbitrary"),
            # Tiny here; raised so a fully weight-resident layout still fits when scaled.
            # TODO(synk): at real DINOv2 sizes (C=1024, MLP=4096) stream bf16 qkv/fc
            # weight tiles over a K grid axis instead of full residency (v7x: 64 MiB VMEM).
            vmem_limit_bytes=48 * 1024 * 1024),
    )(xseq,
      stack('ln1_w'), stack('ln1_b'),
      stack('qkv_w', jnp.bfloat16), stack('qkv_b'),
      stack('proj_w', jnp.bfloat16), stack('proj_b'), stack('ls1'),
      stack('ln2_w'), stack('ln2_b'),
      stack('fc1_w', jnp.bfloat16), stack('fc1_b'),
      stack('fc2_w', jnp.bfloat16), stack('fc2_b'), stack('ls2'),
      params['norm_w'], params['norm_b'])


# ------------------------------- forward pass -------------------------------

def dinov2_forward(x, params):
    """Equivalent of DINOv2.forward: list of 4 feature maps (B, C, H/14, W/14)."""
    B, Cin, H, W = x.shape
    ph, pw = H // PATCH, W // PATCH
    N = ph * pw

    # Patch extraction (glue): unfold non-overlapping 14x14 patches, flatten in
    # (c_in, kh, kw) order to match the flattened conv weight.
    patches = x.reshape(B, Cin, ph, PATCH, pw, PATCH)
    patches = patches.transpose(0, 2, 4, 1, 3, 5).reshape(B * N, Cin * PATCH * PATCH)

    tok = patch_embed(patches.astype(jnp.bfloat16),
                      params['patch_w'].astype(jnp.bfloat16), params['patch_b'])
    tok = tok.reshape(B, N, EMBED)
    cls = jnp.broadcast_to(params['cls_token'], (B, 1, EMBED))
    xseq = jnp.concatenate([cls, tok], axis=1) + params['pos_embed']   # (B, 1+N, C)

    feats = fused_blocks(xseq, params)                                 # (DEPTH, B, T, C)

    outs = []
    for i in range(DEPTH - N_OUT_LAYERS, DEPTH):   # get_intermediate_layers(x, 4)
        feat = feats[i][:, 1:, :]                  # drop cls token -> (B, N, C)
        feat = feat.transpose(0, 2, 1).reshape(B, EMBED, ph, pw)
        outs.append(feat)
    return outs


# ------------------------------- parameters ---------------------------------

def init_params(key, num_patches):
    keys = iter(jax.random.split(key, 8 + 6 * DEPTH))

    def w(shape, scale=0.02):
        return scale * jax.random.normal(next(keys), shape, jnp.float32)

    params = {
        'patch_w': w((IN_CH * PATCH * PATCH, EMBED)),      # flattened conv weight (P, C)
        'patch_b': jnp.zeros((1, EMBED), jnp.float32),
        'cls_token': w((1, 1, EMBED)),
        'pos_embed': w((1, 1 + num_patches, EMBED)),
        'norm_w': jnp.ones((1, EMBED), jnp.float32),
        'norm_b': jnp.zeros((1, EMBED), jnp.float32),
        'blocks': [],
    }
    for _ in range(DEPTH):
        params['blocks'].append({
            'ln1_w': jnp.ones((1, EMBED), jnp.float32),
            'ln1_b': jnp.zeros((1, EMBED), jnp.float32),
            'qkv_w': w((EMBED, 3 * EMBED)),
            'qkv_b': jnp.zeros((1, 3 * EMBED), jnp.float32),
            'proj_w': w((EMBED, EMBED)),
            'proj_b': jnp.zeros((1, EMBED), jnp.float32),
            'ls1': jnp.full((1, EMBED), 0.1, jnp.float32),   # LayerScale gamma
            'ln2_w': jnp.ones((1, EMBED), jnp.float32),
            'ln2_b': jnp.zeros((1, EMBED), jnp.float32),
            'fc1_w': w((EMBED, MLP_HIDDEN)),
            'fc1_b': jnp.zeros((1, MLP_HIDDEN), jnp.float32),
            'fc2_w': w((MLP_HIDDEN, EMBED)),
            'fc2_b': jnp.zeros((1, EMBED), jnp.float32),
            'ls2': jnp.full((1, EMBED), 0.1, jnp.float32),
        })
    return params


if __name__ == "__main__":
    B, H, W = 2, 56, 56                      # H, W must be multiples of the 14x14 patch
    x = jax.random.normal(jax.random.PRNGKey(0), (B, IN_CH, H, W), jnp.float32)
    num_patches = (H // PATCH) * (W // PATCH)
    params = init_params(jax.random.PRNGKey(1), num_patches)

    outs = dinov2_forward(x, params)
    for o in outs:
        jax.block_until_ready(o)

    expected = (B, EMBED, H // PATCH, W // PATCH)
    assert len(outs) == N_OUT_LAYERS, len(outs)
    assert all(o.shape == expected for o in outs), [o.shape for o in outs]
    assert all(bool(jnp.all(jnp.isfinite(o))) for o in outs)
    print("KERNEL_OK")
</pallas_src>

<mosaic_0001>
module attributes {stable_mosaic.version = 11 : i64} {
  func.func @patch_embed_kernel(%arg0: i32, %arg1: memref<32x588xbf16, #tpu.memory_space<vmem>>, %arg2: memref<588x32xbf16, #tpu.memory_space<vmem>>, %arg3: memref<1x32xf32, #tpu.memory_space<vmem>>, %arg4: memref<32x32xf32, #tpu.memory_space<vmem>>) attributes {dimension_semantics = [#tpu.dimension_semantics<arbitrary>], iteration_bounds = array<i64: 1>, scalar_prefetch = 0 : i64, scratch_operands = 0 : i64, tpu.core_type = #tpu.core_type<tc>, window_params = [{pipeline_mode = #tpu.pipeline_mode<synchronous>, transform_indices = @transform_0, window_bounds = array<i64: 32, 588>}, {pipeline_mode = #tpu.pipeline_mode<synchronous>, transform_indices = @transform_1, window_bounds = array<i64: 588, 32>}, {pipeline_mode = #tpu.pipeline_mode<synchronous>, transform_indices = @transform_2, window_bounds = array<i64: 1, 32>}, {pipeline_mode = #tpu.pipeline_mode<synchronous>, transform_indices = @transform_3, window_bounds = array<i64: 32, 32>}]} {
    %c0 = arith.constant 0 : index
    %c0_0 = arith.constant 0 : index
    %0 = vector.load %arg1[%c0, %c0_0] : memref<32x588xbf16, #tpu.memory_space<vmem>>, vector<32x588xbf16>
    %c0_1 = arith.constant 0 : index
    %c0_2 = arith.constant 0 : index
    %1 = vector.load %arg2[%c0_1, %c0_2] : memref<588x32xbf16, #tpu.memory_space<vmem>>, vector<588x32xbf16>
    %cst = arith.constant dense<0.000000e+00> : vector<32x32xf32>
    %2 = tpu.matmul %0, %1, %cst {dimension_numbers = #tpu.dot_dimension_numbers<[1], [0], [0], [1], [0, 0, 1, 1], [], []>} : vector<32x588xbf16>, vector<588x32xbf16>, vector<32x32xf32> -> vector<32x32xf32>
    %c0_3 = arith.constant 0 : index
    %c0_4 = arith.constant 0 : index
    %3 = vector.load %arg3[%c0_3, %c0_4] : memref<1x32xf32, #tpu.memory_space<vmem>>, vector<1x32xf32>
    %4 = vector.broadcast %3 : vector<1x32xf32> to vector<32x32xf32>
    %5 = arith.addf %2, %4 : vector<32x32xf32>
    %c0_5 = arith.constant 0 : index
    %c0_6 = arith.constant 0 : index
    %6 = vector.load %arg4[%c0_5, %c0_6] : memref<32x32xf32, #tpu.memory_space<vmem>>, vector<32x32xf32>
    tpu.vector_store %arg4[%c0_5, %c0_6], %5 {strides = array<i32>} : memref<32x32xf32, #tpu.memory_space<vmem>>, vector<32x32xf32>,
    return
  }
  func.func @transform_0(%arg0: i32) -> (i32, i32) {
    %c0_i32 = arith.constant 0 : i32
    %c0_i32_0 = arith.constant 0 : i32
    %c0_i32_1 = arith.constant 0 : i32
    return %c0_i32, %c0_i32_0 : i32, i32
  }
  func.func @transform_1(%arg0: i32) -> (i32, i32) {
    %c0_i32 = arith.constant 0 : i32
    %c0_i32_0 = arith.constant 0 : i32
    %c0_i32_1 = arith.constant 0 : i32
    return %c0_i32, %c0_i32_0 : i32, i32
  }
  func.func @transform_2(%arg0: i32) -> (i32, i32) {
    %c0_i32 = arith.constant 0 : i32
    %c0_i32_0 = arith.constant 0 : i32
    %c0_i32_1 = arith.constant 0 : i32
    return %c0_i32, %c0_i32_0 : i32, i32
  }
  func.func @transform_3(%arg0: i32) -> (i32, i32) {
    %c0_i32 = arith.constant 0 : i32
    %c0_i32_0 = arith.constant 0 : i32
    %c0_i32_1 = arith.constant 0 : i32
    return %c0_i32, %c0_i32_0 : i32, i32
  }
}

</mosaic_0001>

<bundles_post_ra>
// kernel: tpu_custom_call.1
= control target key start
LH: loop header
LB: loop body
LE: loop exit
PB: predicated region body
PF: predicated region fallthrough
CT: control target
= control target key end

     0   :  { %vm380_vm0 = vcmask 621568   ;;  %s944_s0 = inlined_call_operand.vmem [shape: bf16[32,588], index: 0, kind: input, shape index: {}]   ;;  %s945_s1 = inlined_call_operand.vmem [shape: bf16[588,32], index: 1, kind: input, shape index: {}]   ;;  %s946_s2 = inlined_call_operand.vmem [shape: f32[1,32], index: 2, kind: input, shape index: {}]   ;;  %s947_s3 = inlined_call_operand.hbm [shape: f32[32,32], index: 3, kind: output, shape index: {}]  }
   0x1   :  { %v690_v0 = vld [vmem:[%s945_s1 + $0x40] sm:$0xff]   ;;  %v694_v4 = vld [vmem:[%s945_s1 + $0x48] sm:$0xff]   ;;  %v698_v8 = vld [vmem:[%s945_s1 + $0x50] sm:$0xff]  }
   0x2   :  { %v691_v1 = vld [vmem:[%s945_s1] sm:$0xff]   ;;  %609 = vmatprep.subr.bf16.mxu0 %v690_v0  ;;  %v695_v5 = vld [vmem:[%s945_s1 + $0x8] sm:$0xff]   ;;  %v699_v9 = vld [vmem:[%s945_s1 + $0x10] sm:$0xff]  }
   0x3   :  { %v692_v2 = vld [vmem:[%s945_s1 + $0xc0] sm:$0xff]   ;;  %610 = vmatpush3.bf16.msra.mxu0 %v691_v1  ;;  %v696_v6 = vld [vmem:[%s945_s1 + $0xc8] sm:$0xff]   ;;  %v700_v10 = vld [vmem:[%s945_s1 + $0xd0] sm:$0xff]  }
   0x4   :  { %v693_v3 = vld [vmem:[%s945_s1 + $0x80] sm:$0xff]   ;;  %637 = vmatprep.subr.bf16.mxu1 %v692_v2  ;;  %611 = vmatprep.subr.bf16.mxu0 %v694_v4  ;;  %v697_v7 = vld [vmem:[%s945_s1 + $0x88] sm:$0xff]   ;;  %v701_v11 = vld [vmem:[%s945_s1 + $0x90] sm:$0xff]  }
   0x5   :  { %638 = vmatpush3.bf16.msra.mxu1 %v693_v3  ;;  %v702_v12 = vld [vmem:[%s945_s1 + $0x58] sm:$0xff]   ;;  %v706_v16 = vld [vmem:[%s945_s1 + $0x60] sm:$0xff]   ;;  %v710_v20 = vld [vmem:[%s945_s1 + $0x68] sm:$0xff]  }
   0x6   :  { %639 = vmatprep.subr.bf16.mxu1 %v696_v6  ;;  %v703_v13 = vld [vmem:[%s945_s1 + $0x18] sm:$0xff]   ;;  %v707_v17 = vld [vmem:[%s945_s1 + $0x20] sm:$0xff]   ;;  %v711_v21 = vld [vmem:[%s945_s1 + $0x28] sm:$0xff]  }
   0x7   :  { %612 = vmatpush3.bf16.msra.mxu0 %v695_v5  ;;  %v704_v14 = vld [vmem:[%s945_s1 + $0xd8] sm:$0xff]   ;;  %v708_v18 = vld [vmem:[%s945_s1 + $0xe0] sm:$0xff]   ;;  %v712_v22 = vld [vmem:[%s945_s1 + $0xe8] sm:$0xff]  }
   0x8   :  { %613 = vmatprep.subr.bf16.mxu0 %v698_v8  ;;  %v705_v15 = vld [vmem:[%s945_s1 + $0x98] sm:$0xff]   ;;  %v709_v19 = vld [vmem:[%s945_s1 + $0xa0] sm:$0xff]   ;;  %v713_v23 = vld [vmem:[%s945_s1 + $0xa8] sm:$0xff]  }
   0x9   :  { %640 = vmatpush3.bf16.msra.mxu1 %v697_v7  ;;  %v714_v24 = vld [vmem:[%s945_s1 + $0x70] sm:$0xff]   ;;  %v718_v28 = vld [vmem:[%s945_s1 + $0x78] sm:$0xff]   ;;  %v725_v34 = vld [vmem:[%s945_s1 + $0x100] sm:$0xff]  }
   0xa   :  { %641 = vmatprep.subr.bf16.mxu1 %v700_v10  ;;  %v715_v25 = vld [vmem:[%s945_s1 + $0x30] sm:$0xff]   ;;  %v719_v29 = vld [vmem:[%s945_s1 + $0x38] sm:$0xff]   ;;  %v728_v36 = vld [vmem:[%s944_s0 + $0xc] ss:$20 sps:$4 sm:$0xff]  }
   0xb   :  { %614 = vmatpush3.bf16.msra.mxu0 %v699_v9  ;;  %v716_v26 = vld [vmem:[%s945_s1 + $0xf0] sm:$0xff]   ;;  %v720_v30 = vld [vmem:[%s945_s1 + $0xf8] sm:$0xff]   ;;  %v729_v37 = vld [vmem:[%s945_s1 + $0x108] sm:$0xff]   ;;  %472 = vmatprep.mubr.bf16.mxu1 %v728_v36 }
   0xc   :  { %615 = vmatprep.subr.bf16.mxu0 %v702_v12  ;;  %v717_v27 = vld [vmem:[%s945_s1 + $0xb0] sm:$0xff]   ;;  %v723_v32 = vld [vmem:[%s944_s0 + $0x4] ss:$20 sps:$4 sm:$0xff]   ;;  %v726_v35 = vld [vmem:[%s944_s0 + $0x8] ss:$20 sps:$4 sm:$0xff]  }
   0xd   :  { %642 = vmatpush3.bf16.msra.mxu1 %v701_v11  ;;  %v721_v31 = vld [vmem:[%s944_s0] ss:$20 sps:$4 sm:$0xff]   ;;  %v724_v33 = vld [vmem:[%s945_s1 + $0xb8] sm:$0xff]   ;;  %423 = vmatprep.mubr.bf16.mxu0 %v723_v32  ;;  %v736_v42 = vld [vmem:[%s944_s0 + $0x30] ss:$20 sps:$4 sm:$0xff]  }
   0xe   :  { %643 = vmatprep.subr.bf16.mxu1 %v704_v14  ;;  %v730_v38 = vld [vmem:[%s944_s0 + $0x2c] ss:$20 sps:$4 sm:$0xff]   ;;  %v732_v39 = vld [vmem:[%s945_s1 + $0x110] sm:$0xff]   ;;  %v733_v40 = vld [vmem:[%s944_s0 + $0x28] ss:$20 sps:$4 sm:$0xff]  }
   0xf   :  { %616 = vmatpush3.bf16.msra.mxu0 %v703_v13  ;;  %v734_v41 = vld [vmem:[%s944_s0 + $0x34] ss:$20 sps:$4 sm:$0xff]   ;;  %v737_v43 = vld [vmem:[%s945_s1 + $0x118] sm:$0xff]   ;;  %v739_v44 = vld [vmem:[%s944_s0 + $0x10] ss:$20 sps:$4 sm:$0xff]  }
  0x10   :  { %617 = vmatprep.subr.bf16.mxu0 %v706_v16 }
  0x11   :  { %644 = vmatpush3.bf16.msra.mxu1 %v705_v15 }
  0x12   :  { %645 = vmatprep.subr.bf16.mxu1 %v708_v18 }
  0x13   :  { %618 = vmatpush3.bf16.msra.mxu0 %v707_v17 }
  0x14   :  { %619 = vmatprep.subr.bf16.mxu0 %v710_v20 }
  0x15   :  { %646 = vmatpush3.bf16.msra.mxu1 %v709_v19 }
  0x16   :  { %647 = vmatprep.subr.bf16.mxu1 %v712_v22 }
  0x17   :  { %620 = vmatpush3.bf16.msra.mxu0 %v711_v21 }
  0x18   :  { %621 = vmatprep.subr.bf16.mxu0 %v714_v24 }
  0x19   :  { %648 = vmatpush3.bf16.msra.mxu1 %v713_v23 }
  0x1a   :  { %649 = vmatprep.subr.bf16.mxu1 %v716_v26 }
  0x1b   :  { %622 = vmatpush3.bf16.msra.mxu0 %v715_v25 }
  0x1c   :  { %623 = vmatprep.subr.bf16.mxu0 %v718_v28 }
  0x1d   :  { %650 = vmatpush3.bf16.msra.mxu1 %v717_v27 }
  0x1e   :  { %651 = vmatprep.subr.bf16.mxu1 %v720_v30 }
  0x1f   :  { %624 = vmatpush3.bf16.msra.mxu0 %v719_v29 }
  0x20   :  { %672 = vmatprep.subr.bf16.mxu0 %v725_v34 }
  0x21   :  { %652 = vmatpush3.bf16.msra.mxu1 %v724_v33 }
  0x22   :  { %424 = vmatmul.mubr.bf16.vlgmr.msra.gmra.mrb[0].mxu0 %v721_v31 }
  0x23   :  { %673 = vmatpush3.bf16.msra.mxu0 %v725_v34  ;;  %431 = vmatprep.mubr.bf16.mxu0 %v730_v38 }
  0x24   :  { %473 = vmatmul.mubr.bf16.vlgmr.msra.gmra.mrb[0].mxu1 %v726_v35  ;;  %674 = vmatprep.subr.bf16.mxu0 %v729_v37 }
  0x25   :  { %480 = vmatprep.mubr.bf16.mxu1 %v734_v41 }
  0x27   :  { %675 = vmatpush3.bf16.msra.mxu0 %v729_v37 }
  0x28   :  { %676 = vmatprep.subr.bf16.mxu0 %v732_v39 }
  0x2a   :  { %432 = vmatmul.mubr.bf16.gmra.mrb[4].mxu0 %v733_v40 }
  0x2b   :  { %8 = vsyncpa [#allocation3], 0  ;;  %677 = vmatpush3.bf16.msra.mxu0 %v732_v39  ;;  %682 = vmatprep.mubr.msk.bf16.mxu0 %vm380_vm0, %v739_v44  ;;  %v738_v45 = vld [vmem:[%s945_s1 + $0x120] sm:$0x3f]   ;;  %vm387_vm1 = vcmask 1045504   ;;  %vm538_vm2 = vcmask 261120  }
  0x2c   :  { %481 = vmatmul.mubr.bf16.gmra.mrb[4].mxu1 %v736_v42  ;;  %678 = vmatprep.subr.bf16.mxu0 %v737_v43  ;;  %v389_v46 = vsel %vm387_vm1, %v738_v45, 0  ;;  %v740_v47 = vld [vmem:[%s944_s0 + $0x38] ss:$20 sps:$4 sm:$0xff]   ;;  %v559_v49 = vld [vmem:[%s946_s2] ss:$0 sm:$0xff]  ;;  %s765_s0 = smov [#allocation2]  }
  0x2d   :  { %s548_s1 = sshll.u32 %s765_s0, 4  ;;  %s549_s1 = int_to_ptr.vmem [resolvable:$true] %s548_s1 }
  0x2e   :  { %s741_s2 = scalar_lea.vmem %s549_s1, 512  ;;  %p746_p1 = scmp.lt.s32.totalorder %s549_s1, %s549_s1 }
  0x2f   :  { %679 = vmatpush3.bf16.msra.mxu0 %v737_v43  ;;  %p742_p0 = scmp.ne.s32.totalorder %s549_s1, %s741_s2  ;;  %p747_p2 = scmp.lt.s32.totalorder %s741_s2, %s741_s2 }
  0x30   :  { %686 = vmatprep.subr.msk.bf16.mxu0 %vm387_vm1, %v738_v45 }
  0x31   :  { %p748_p3 = por %p747_p2, %p746_p1 }
  0x33   :  { %681 = vmatpush3.bf16.msra.mxu0 %v389_v46  ;;  %p749_p4 = pnand %p748_p3, %p742_p0 }
  0x36   :  { %683 = vmatmul.mubr.msk.bf16.vlgmr.msra.gmra.mrb[8].mxu0 %vm380_vm0, %v740_v47 }
  0xf5   :  { %v625_v48 = vpop.f32.mrb[0].mxu0 }
  0xf6   :  { %v626_v50 = vpop.f32.mrb[1].mxu0 }
  0xf7   :  { %v627_v51 = vadd.f32 %v626_v50, %v625_v48  ;;  %v628_v52 = vpop.f32.mrb[2].mxu0  ;;  %v653_v53 = vpop.f32.mrb[0].mxu1 }
  0xf8   :  { %v629_v54 = vpop.f32.mrb[3].mxu0  ;;  %v654_v57 = vpop.f32.mrb[1].mxu1 }
  0xf9   :  { %v426_v55 = vadd.f32 %v627_v51, %v559_v49  ;;  %v630_v56 = vadd.f32 %v629_v54, %v628_v52  ;;  %v655_v58 = vadd.f32 %v654_v57, %v653_v53  ;;  %v656_v59 = vpop.f32.mrb[2].mxu1 }
  0xfa   :  { %v657_v61 = vpop.f32.mrb[3].mxu1 }
  0xfb   :  { %v429_v60 = vadd.f32 %v630_v56, %v559_v49  ;;  %v658_v62 = vadd.f32 %v657_v61, %v656_v59  ;;  %v475_v63 = vadd.f32 %v655_v58, %v426_v55 }
  0xfd   :  { %v631_v0 = vpop.f32.mrb[4].mxu0  ;;  %v478_v2 = vadd.f32 %v658_v62, %v429_v60 }
  0xfe   :  { %v632_v1 = vpop.f32.mrb[5].mxu0 }
  0xff   :  { %v633_v3 = vadd.f32 %v632_v1, %v631_v0  ;;  %v634_v4 = vpop.f32.mrb[6].mxu0  ;;  %v659_v5 = vpop.f32.mrb[4].mxu1 }
 0x100   :  { %v635_v6 = vpop.f32.mrb[7].mxu0  ;;  %v660_v9 = vpop.f32.mrb[5].mxu1 }
 0x101   :  { %v434_v7 = vadd.f32 %v633_v3, %v559_v49  ;;  %v636_v8 = vadd.f32 %v635_v6, %v634_v4  ;;  %v661_v10 = vadd.f32 %v660_v9, %v659_v5  ;;  %v662_v11 = vpop.f32.mrb[6].mxu1 }
 0x102   :  { %v663_v13 = vpop.f32.mrb[7].mxu1 }
 0x103   :  { %v437_v12 = vadd.f32 %v636_v8, %v559_v49  ;;  %v664_v14 = vadd.f32 %v663_v13, %v662_v11  ;;  %v483_v15 = vadd.f32 %v661_v10, %v434_v7 }
 0x105   :  { %v486_v16 = vadd.f32 %v664_v14, %v437_v12 }
 0x109   :  { %v684_v17 = vpop.f32.mrb[8].mxu0 }
 0x10a   :  { %v532_v18 = vadd.f32 %v684_v17, %v483_v15  ;;  %v523_v19 = vpop.f32.mrb[9].mxu0 }
 0x10b   :  { %v524_v20 = vadd.f32 %v523_v19, %v475_v63  ;;  %v685_v21 = vpop.f32.mrb[10].mxu0 }
 0x10c   :  { %541 = vst.msk [vmem:[#allocation2 + $0x10] sm:$0xff] %vm538_vm2, %v532_v18  ;;  %v535_v22 = vadd.f32 %v685_v21, %v486_v16  ;;  %v526_v23 = vpop.f32.mrb[11].mxu0 }
 0x10d   :  { %539 = vst.msk [vmem:[#allocation2] sm:$0xff] %vm538_vm2, %v524_v20  ;;  %v527_v24 = vadd.f32 %v526_v23, %v478_v2 }
 0x10e   :  { %542 = vst.msk [vmem:[#allocation2 + $0x18] sm:$0xff] %vm538_vm2, %v535_v22 }
 0x10f   :  { %540 = vst.msk [vmem:[#allocation2 + $0x8] sm:$0xff] %vm538_vm2, %v527_v24 }
 0x110   :  { %752 = shalt.err (!%p749_p4)
}
 0x111   :  { %s753_s29 = scalar_lea.hbm %s947_s3, 512 }
 0x112   :  { %p754_p5 = scmp.ne.s32.totalorder %s947_s3, %s753_s29  ;;  %p757_p6 = scmp.lt.u32.totalorder %s753_s29, %s947_s3 }
 0x114   :  { %p759_p7 = pnand %p757_p6, %p754_p5 }
 0x116   :  { %762 = shalt.err (!%p759_p7)
}
 0x117   :  { %s766_s7 = smov 128   ;;  %s767_s8 = smov 8  }
 0x118   :  { %554 = dma.vmem_to_hbm [thread:$0]  %s549_s1, 512, %s947_s3, [#allocation3], %s766_s7, %s766_s7, %s767_s8  }
 0x119   :  { %763 = dma.done.wait [#allocation3], 512  }
 0x11a   :  { %764 = vsyncadd [#allocation3], 4294966784 }
 0x11b   :  { %558 = vsyncpa [#allocation3], 1 }

</bundles_post_ra>
